<compile_context>
chip_gen: v7x
topology: tpu7x:2x2x1
jax: 0.10.0
libtpu: 0.0.40
codegen_flags: <defaults>
</compile_context>

<pallas_src>
import functools

import jax
import jax.numpy as jnp
import numpy as np
from jax.experimental import pallas as pl
from jax.experimental.pallas import tpu as pltpu

CHAR_EMBED = 50


def _round_up(x, m):
    return (x + m - 1) // m * m


def char_cnn_highway_kernel(x_ref, wconv_ref, bconv_ref, whwy_ref, bhwy_ref,
                            out_ref, *, L, C, K, padding):
    """x_ref: (TN, L*C) bf16 — char embeddings, time flattened onto lanes.
    wconv_ref: (K*C, Fp) bf16; bconv_ref: (1, Fp) f32.
    whwy_ref: (Fp, 2*Fp) bf16 (proj | gate); bhwy_ref: (1, 2*Fp) f32.
    out_ref: (TN, Fp) f32."""
    TN = x_ref.shape[0]
    Fp = out_ref.shape[1]
    L_out = L + 2 * padding - K + 1

    # ---- Conv1d + max-over-time: one fused matmul per output time step ----
    # (bias add and ReLU hoisted below the loop; -inf init is safe, L_out >= 1)
    maxv = jnp.full((TN, Fp), -jnp.inf, dtype=jnp.float32)
    for t in range(L_out):                       # static, small trip count
        lo = max(0, padding - t)                 # first valid tap (zero-pad)
        hi = min(K, L + padding - t)             # one past last valid tap
        x_win = x_ref[:, (t - padding + lo) * C:(t - padding + hi) * C]
        w_win = wconv_ref[lo * C:hi * C, :]
        acc = jnp.dot(x_win, w_win, preferred_element_type=jnp.float32)
        maxv = jnp.maximum(maxv, acc)
    pooled = jnp.maximum(maxv + bconv_ref[...], 0.0)

    # ---- Highway (proj and gate fused into one matmul) ----
    h = jnp.dot(pooled.astype(whwy_ref.dtype), whwy_ref[...],
                preferred_element_type=jnp.float32) + bhwy_ref[...]
    x_proj = jnp.maximum(h[:, :Fp], 0.0)
    x_gate = jax.nn.sigmoid(h[:, Fp:])
    out_ref[...] = x_gate * x_proj + (1.0 - x_gate) * pooled


def model_embeddings_forward(input_ids, params, *, word_embed_size,
                             kernel_size=5, padding=1, tile_n=256):
    """input_ids: int32 (sentence_length, batch_size, max_word_length).
    Returns float32 (sentence_length, batch_size, word_embed_size)."""
    S, B, L = input_ids.shape
    C, K, F = CHAR_EMBED, kernel_size, word_embed_size
    Fp = _round_up(max(F, 128), 128)             # lane-dense output width
    N = S * B
    L_out = L + 2 * padding - K + 1
    assert L_out >= 1

    # Char-embedding gather (glue); flatten time*channel onto lanes, bf16 operands.
    emb = params["char_embedding"][input_ids]                 # (S, B, L, C)
    x = emb.reshape(N, L * C).astype(jnp.bfloat16)

    # Row tile: multiple of 8, capped at tile_n; pad N up to a whole tile.
    TN = min(tile_n, _round_up(N, 8))
    N_pad = _round_up(N, TN)
    if N_pad != N:
        x = jnp.pad(x, ((0, N_pad - N), (0, 0)))

    # Conv weight flattened over taps: (K*C, Fp); bias padded to Fp lanes.
    w_conv = jnp.pad(params["w_conv"].reshape(K * C, F),
                     ((0, 0), (0, Fp - F))).astype(jnp.bfloat16)
    b_conv = jnp.pad(params["b_conv"],
                     ((0, 0), (0, Fp - F))).astype(jnp.float32)

    # Highway proj/gate fused into one (Fp, 2*Fp) weight + (1, 2*Fp) bias.
    w_proj = jnp.pad(params["w_proj"], ((0, Fp - F), (0, Fp - F)))
    w_gate = jnp.pad(params["w_gate"], ((0, Fp - F), (0, Fp - F)))
    w_hwy = jnp.concatenate([w_proj, w_gate], axis=1).astype(jnp.bfloat16)
    b_hwy = jnp.concatenate(
        [jnp.pad(params["b_proj"], ((0, 0), (0, Fp - F))),
         jnp.pad(params["b_gate"], ((0, 0), (0, Fp - F)))],
        axis=1).astype(jnp.float32)

    kernel = functools.partial(char_cnn_highway_kernel,
                               L=L, C=C, K=K, padding=padding)

    out = pl.pallas_call(
        kernel,
        out_shape=jax.ShapeDtypeStruct((N_pad, Fp), jnp.float32),
        grid=(N_pad // TN,),
        in_specs=[
            pl.BlockSpec((TN, L * C), lambda i: (i, 0)),      # activation tile
            pl.BlockSpec((K * C, Fp), lambda i: (0, 0)),      # conv weight (resident)
            pl.BlockSpec((1, Fp), lambda i: (0, 0)),
            pl.BlockSpec((Fp, 2 * Fp), lambda i: (0, 0)),     # highway weight (resident)
            pl.BlockSpec((1, 2 * Fp), lambda i: (0, 0)),
        ],
        out_specs=pl.BlockSpec((TN, Fp), lambda i: (i, 0)),
        compiler_params=pltpu.CompilerParams(
            dimension_semantics=("parallel",)),
    )(x, w_conv, b_conv, w_hwy, b_hwy)

    # Dropout(p=0.3) is identity in eval mode.
    # TODO(synk): training-mode stochastic dropout (pltpu.prng_random_bits) not implemented.
    return out[:N, :F].reshape(S, B, F)


def reference_forward(input_ids, params, *, word_embed_size,
                      kernel_size=5, padding=1):
    """Pure-JAX f32 reference with identical math, for correctness check."""
    S, B, L = input_ids.shape
    emb = params["char_embedding"][input_ids].reshape(S * B, L, CHAR_EMBED)
    x = jnp.pad(emb, ((0, 0), (padding, padding), (0, 0)))
    L_out = L + 2 * padding - kernel_size + 1
    conv = jnp.stack(
        [sum(x[:, t + k, :] @ params["w_conv"][k] for k in range(kernel_size))
         + params["b_conv"][0] for t in range(L_out)], axis=1)
    pooled = jnp.max(jax.nn.relu(conv), axis=1)
    x_proj = jax.nn.relu(pooled @ params["w_proj"] + params["b_proj"][0])
    x_gate = jax.nn.sigmoid(pooled @ params["w_gate"] + params["b_gate"][0])
    hwy = x_gate * x_proj + (1.0 - x_gate) * pooled
    return hwy.reshape(S, B, word_embed_size)


def init_params(key, vocab_size, word_embed_size, kernel_size=5):
    ks = jax.random.split(key, 7)
    emb = 0.1 * jax.random.normal(ks[0], (vocab_size, CHAR_EMBED), jnp.float32)
    emb = emb.at[0].set(0.0)  # padding_idx=0
    return {
        "char_embedding": emb,
        "w_conv": 0.1 * jax.random.normal(
            ks[1], (kernel_size, CHAR_EMBED, word_embed_size), jnp.float32),
        "b_conv": 0.1 * jax.random.normal(ks[2], (1, word_embed_size), jnp.float32),
        "w_proj": 0.1 * jax.random.normal(
            ks[3], (word_embed_size, word_embed_size), jnp.float32),
        "b_proj": 0.1 * jax.random.normal(ks[4], (1, word_embed_size), jnp.float32),
        "w_gate": 0.1 * jax.random.normal(
            ks[5], (word_embed_size, word_embed_size), jnp.float32),
        "b_gate": 0.1 * jax.random.normal(ks[6], (1, word_embed_size), jnp.float32),
    }


if __name__ == "__main__":
    sentence_length, batch_size, max_word_length = 8, 2, 12
    word_embed_size, char_vocab_size = 32, 30

    key = jax.random.PRNGKey(0)
    k_param, k_input = jax.random.split(key)
    params = init_params(k_param, char_vocab_size, word_embed_size)
    input_ids = jax.random.randint(
        k_input, (sentence_length, batch_size, max_word_length),
        0, char_vocab_size, dtype=jnp.int32)

    out = model_embeddings_forward(input_ids, params,
                                   word_embed_size=word_embed_size)
    out = jax.block_until_ready(out)

    ref = reference_forward(input_ids, params, word_embed_size=word_embed_size)
    assert out.shape == (sentence_length, batch_size, word_embed_size)
    np.testing.assert_allclose(np.asarray(out), np.asarray(ref),
                               rtol=5e-2, atol=5e-3)
    print("KERNEL_OK")
</pallas_src>

<mosaic_0001>
module attributes {stable_mosaic.version = 11 : i64} {
  func.func @char_cnn_highway_kernel(%arg0: i32, %arg1: memref<16x600xbf16, #tpu.memory_space<vmem>>, %arg2: memref<250x128xbf16, #tpu.memory_space<vmem>>, %arg3: memref<1x128xf32, #tpu.memory_space<vmem>>, %arg4: memref<128x256xbf16, #tpu.memory_space<vmem>>, %arg5: memref<1x256xf32, #tpu.memory_space<vmem>>, %arg6: memref<16x128xf32, #tpu.memory_space<vmem>>) attributes {dimension_semantics = [#tpu.dimension_semantics<parallel>], iteration_bounds = array<i64: 1>, scalar_prefetch = 0 : i64, scratch_operands = 0 : i64, tpu.core_type = #tpu.core_type<tc>, window_params = [{transform_indices = @transform_0, window_bounds = array<i64: 16, 600>}, {pipeline_mode = #tpu.pipeline_mode<synchronous>, transform_indices = @transform_1, window_bounds = array<i64: 250, 128>}, {pipeline_mode = #tpu.pipeline_mode<synchronous>, transform_indices = @transform_2, window_bounds = array<i64: 1, 128>}, {pipeline_mode = #tpu.pipeline_mode<synchronous>, transform_indices = @transform_3, window_bounds = array<i64: 128, 256>}, {pipeline_mode = #tpu.pipeline_mode<synchronous>, transform_indices = @transform_4, window_bounds = array<i64: 1, 256>}, {transform_indices = @transform_5, window_bounds = array<i64: 16, 128>}]} {
    %cst = arith.constant 0xFF800000 : f32
    %0 = vector.broadcast %cst : f32 to vector<16x128xf32>
    %c0 = arith.constant 0 : index
    %c0_0 = arith.constant 0 : index
    %1 = vector.load %arg1[%c0, %c0_0] : memref<16x600xbf16, #tpu.memory_space<vmem>>, vector<16x200xbf16>
    %c50 = arith.constant 50 : index
    %c0_1 = arith.constant 0 : index
    %2 = vector.load %arg2[%c50, %c0_1] : memref<250x128xbf16, #tpu.memory_space<vmem>>, vector<200x128xbf16>
    %cst_2 = arith.constant dense<0.000000e+00> : vector<16x128xf32>
    %3 = tpu.matmul %1, %2, %cst_2 {dimension_numbers = #tpu.dot_dimension_numbers<[1], [0], [0], [1], [0, 0, 1, 1], [], []>} : vector<16x200xbf16>, vector<200x128xbf16>, vector<16x128xf32> -> vector<16x128xf32>
    %4 = arith.maximumf %0, %3 : vector<16x128xf32>
    %c0_3 = arith.constant 0 : index
    %c0_4 = arith.constant 0 : index
    %5 = vector.load %arg1[%c0_3, %c0_4] : memref<16x600xbf16, #tpu.memory_space<vmem>>, vector<16x250xbf16>
    %c0_5 = arith.constant 0 : index
    %c0_6 = arith.constant 0 : index
    %6 = vector.load %arg2[%c0_5, %c0_6] : memref<250x128xbf16, #tpu.memory_space<vmem>>, vector<250x128xbf16>
    %cst_7 = arith.constant dense<0.000000e+00> : vector<16x128xf32>
    %7 = tpu.matmul %5, %6, %cst_7 {dimension_numbers = #tpu.dot_dimension_numbers<[1], [0], [0], [1], [0, 0, 1, 1], [], []>} : vector<16x250xbf16>, vector<250x128xbf16>, vector<16x128xf32> -> vector<16x128xf32>
    %8 = arith.maximumf %4, %7 : vector<16x128xf32>
    %c0_8 = arith.constant 0 : index
    %c50_9 = arith.constant 50 : index
    %9 = vector.load %arg1[%c0_8, %c50_9] : memref<16x600xbf16, #tpu.memory_space<vmem>>, vector<16x250xbf16>
    %c0_10 = arith.constant 0 : index
    %c0_11 = arith.constant 0 : index
    %10 = vector.load %arg2[%c0_10, %c0_11] : memref<250x128xbf16, #tpu.memory_space<vmem>>, vector<250x128xbf16>
    %cst_12 = arith.constant dense<0.000000e+00> : vector<16x128xf32>
    %11 = tpu.matmul %9, %10, %cst_12 {dimension_numbers = #tpu.dot_dimension_numbers<[1], [0], [0], [1], [0, 0, 1, 1], [], []>} : vector<16x250xbf16>, vector<250x128xbf16>, vector<16x128xf32> -> vector<16x128xf32>
    %12 = arith.maximumf %8, %11 : vector<16x128xf32>
    %c0_13 = arith.constant 0 : index
    %c100 = arith.constant 100 : index
    %13 = vector.load %arg1[%c0_13, %c100] : memref<16x600xbf16, #tpu.memory_space<vmem>>, vector<16x250xbf16>
    %c0_14 = arith.constant 0 : index
    %c0_15 = arith.constant 0 : index
    %14 = vector.load %arg2[%c0_14, %c0_15] : memref<250x128xbf16, #tpu.memory_space<vmem>>, vector<250x128xbf16>
    %cst_16 = arith.constant dense<0.000000e+00> : vector<16x128xf32>
    %15 = tpu.matmul %13, %14, %cst_16 {dimension_numbers = #tpu.dot_dimension_numbers<[1], [0], [0], [1], [0, 0, 1, 1], [], []>} : vector<16x250xbf16>, vector<250x128xbf16>, vector<16x128xf32> -> vector<16x128xf32>
    %16 = arith.maximumf %12, %15 : vector<16x128xf32>
    %c0_17 = arith.constant 0 : index
    %c150 = arith.constant 150 : index
    %17 = vector.load %arg1[%c0_17, %c150] : memref<16x600xbf16, #tpu.memory_space<vmem>>, vector<16x250xbf16>
    %c0_18 = arith.constant 0 : index
    %c0_19 = arith.constant 0 : index
    %18 = vector.load %arg2[%c0_18, %c0_19] : memref<250x128xbf16, #tpu.memory_space<vmem>>, vector<250x128xbf16>
    %cst_20 = arith.constant dense<0.000000e+00> : vector<16x128xf32>
    %19 = tpu.matmul %17, %18, %cst_20 {dimension_numbers = #tpu.dot_dimension_numbers<[1], [0], [0], [1], [0, 0, 1, 1], [], []>} : vector<16x250xbf16>, vector<250x128xbf16>, vector<16x128xf32> -> vector<16x128xf32>
    %20 = arith.maximumf %16, %19 : vector<16x128xf32>
    %c0_21 = arith.constant 0 : index
    %c200 = arith.constant 200 : index
    %21 = vector.load %arg1[%c0_21, %c200] : memref<16x600xbf16, #tpu.memory_space<vmem>>, vector<16x250xbf16>
    %c0_22 = arith.constant 0 : index
    %c0_23 = arith.constant 0 : index
    %22 = vector.load %arg2[%c0_22, %c0_23] : memref<250x128xbf16, #tpu.memory_space<vmem>>, vector<250x128xbf16>
    %cst_24 = arith.constant dense<0.000000e+00> : vector<16x128xf32>
    %23 = tpu.matmul %21, %22, %cst_24 {dimension_numbers = #tpu.dot_dimension_numbers<[1], [0], [0], [1], [0, 0, 1, 1], [], []>} : vector<16x250xbf16>, vector<250x128xbf16>, vector<16x128xf32> -> vector<16x128xf32>
    %24 = arith.maximumf %20, %23 : vector<16x128xf32>
    %c0_25 = arith.constant 0 : index
    %c250 = arith.constant 250 : index
    %25 = vector.load %arg1[%c0_25, %c250] : memref<16x600xbf16, #tpu.memory_space<vmem>>, vector<16x250xbf16>
    %c0_26 = arith.constant 0 : index
    %c0_27 = arith.constant 0 : index
    %26 = vector.load %arg2[%c0_26, %c0_27] : memref<250x128xbf16, #tpu.memory_space<vmem>>, vector<250x128xbf16>
    %cst_28 = arith.constant dense<0.000000e+00> : vector<16x128xf32>
    %27 = tpu.matmul %25, %26, %cst_28 {dimension_numbers = #tpu.dot_dimension_numbers<[1], [0], [0], [1], [0, 0, 1, 1], [], []>} : vector<16x250xbf16>, vector<250x128xbf16>, vector<16x128xf32> -> vector<16x128xf32>
    %28 = arith.maximumf %24, %27 : vector<16x128xf32>
    %c0_29 = arith.constant 0 : index
    %c300 = arith.constant 300 : index
    %29 = vector.load %arg1[%c0_29, %c300] : memref<16x600xbf16, #tpu.memory_space<vmem>>, vector<16x250xbf16>
    %c0_30 = arith.constant 0 : index
    %c0_31 = arith.constant 0 : index
    %30 = vector.load %arg2[%c0_30, %c0_31] : memref<250x128xbf16, #tpu.memory_space<vmem>>, vector<250x128xbf16>
    %cst_32 = arith.constant dense<0.000000e+00> : vector<16x128xf32>
    %31 = tpu.matmul %29, %30, %cst_32 {dimension_numbers = #tpu.dot_dimension_numbers<[1], [0], [0], [1], [0, 0, 1, 1], [], []>} : vector<16x250xbf16>, vector<250x128xbf16>, vector<16x128xf32> -> vector<16x128xf32>
    %32 = arith.maximumf %28, %31 : vector<16x128xf32>
    %c0_33 = arith.constant 0 : index
    %c350 = arith.constant 350 : index
    %33 = vector.load %arg1[%c0_33, %c350] : memref<16x600xbf16, #tpu.memory_space<vmem>>, vector<16x250xbf16>
    %c0_34 = arith.constant 0 : index
    %c0_35 = arith.constant 0 : index
    %34 = vector.load %arg2[%c0_34, %c0_35] : memref<250x128xbf16, #tpu.memory_space<vmem>>, vector<250x128xbf16>
    %cst_36 = arith.constant dense<0.000000e+00> : vector<16x128xf32>
    %35 = tpu.matmul %33, %34, %cst_36 {dimension_numbers = #tpu.dot_dimension_numbers<[1], [0], [0], [1], [0, 0, 1, 1], [], []>} : vector<16x250xbf16>, vector<250x128xbf16>, vector<16x128xf32> -> vector<16x128xf32>
    %36 = arith.maximumf %32, %35 : vector<16x128xf32>
    %c0_37 = arith.constant 0 : index
    %c400 = arith.constant 400 : index
    %37 = vector.load %arg1[%c0_37, %c400] : memref<16x600xbf16, #tpu.memory_space<vmem>>, vector<16x200xbf16>
    %c0_38 = arith.constant 0 : index
    %c0_39 = arith.constant 0 : index
    %38 = vector.load %arg2[%c0_38, %c0_39] : memref<250x128xbf16, #tpu.memory_space<vmem>>, vector<200x128xbf16>
    %cst_40 = arith.constant dense<0.000000e+00> : vector<16x128xf32>
    %39 = tpu.matmul %37, %38, %cst_40 {dimension_numbers = #tpu.dot_dimension_numbers<[1], [0], [0], [1], [0, 0, 1, 1], [], []>} : vector<16x200xbf16>, vector<200x128xbf16>, vector<16x128xf32> -> vector<16x128xf32>
    %40 = arith.maximumf %36, %39 : vector<16x128xf32>
    %c0_41 = arith.constant 0 : index
    %c0_42 = arith.constant 0 : index
    %41 = vector.load %arg3[%c0_41, %c0_42] : memref<1x128xf32, #tpu.memory_space<vmem>>, vector<1x128xf32>
    %42 = vector.broadcast %41 : vector<1x128xf32> to vector<16x128xf32>
    %43 = arith.addf %40, %42 : vector<16x128xf32>
    %cst_43 = arith.constant 0.000000e+00 : f32
    %44 = vector.broadcast %cst_43 : f32 to vector<16x128xf32>
    %45 = arith.maximumf %43, %44 : vector<16x128xf32>
    %46 = arith.truncf %45 : vector<16x128xf32> to vector<16x128xbf16>
    %c0_44 = arith.constant 0 : index
    %c0_45 = arith.constant 0 : index
    %47 = vector.load %arg4[%c0_44, %c0_45] : memref<128x256xbf16, #tpu.memory_space<vmem>>, vector<128x256xbf16>
    %cst_46 = arith.constant dense<0.000000e+00> : vector<16x256xf32>
    %48 = tpu.matmul %46, %47, %cst_46 {dimension_numbers = #tpu.dot_dimension_numbers<[1], [0], [0], [1], [0, 0, 1, 1], [], []>} : vector<16x128xbf16>, vector<128x256xbf16>, vector<16x256xf32> -> vector<16x256xf32>
    %c0_47 = arith.constant 0 : index
    %c0_48 = arith.constant 0 : index
    %49 = vector.load %arg5[%c0_47, %c0_48] : memref<1x256xf32, #tpu.memory_space<vmem>>, vector<1x256xf32>
    %50 = vector.broadcast %49 : vector<1x256xf32> to vector<16x256xf32>
    %51 = arith.addf %48, %50 : vector<16x256xf32>
    %52 = vector.extract_strided_slice %51 {offsets = [0, 0], sizes = [16, 128], strides = [1, 1]} : vector<16x256xf32> to vector<16x128xf32>
    %cst_49 = arith.constant 0.000000e+00 : f32
    %53 = vector.broadcast %cst_49 : f32 to vector<16x128xf32>
    %54 = arith.maximumf %52, %53 : vector<16x128xf32>
    %55 = vector.extract_strided_slice %51 {offsets = [0, 128], sizes = [16, 128], strides = [1, 1]} : vector<16x256xf32> to vector<16x128xf32>
    %56 = arith.negf %55 : vector<16x128xf32>
    %57 = math.exp %56 : vector<16x128xf32>
    %cst_50 = arith.constant 1.000000e+00 : f32
    %58 = vector.broadcast %cst_50 : f32 to vector<16x128xf32>
    %59 = arith.addf %58, %57 : vector<16x128xf32>
    %60 = arith.divf %58, %59 : vector<16x128xf32>
    %61 = arith.mulf %60, %54 : vector<16x128xf32>
    %cst_51 = arith.constant 1.000000e+00 : f32
    %62 = vector.broadcast %cst_51 : f32 to vector<16x128xf32>
    %63 = arith.subf %62, %60 : vector<16x128xf32>
    %64 = arith.mulf %63, %45 : vector<16x128xf32>
    %65 = arith.addf %61, %64 : vector<16x128xf32>
    %c0_52 = arith.constant 0 : index
    %c0_53 = arith.constant 0 : index
    %66 = vector.load %arg6[%c0_52, %c0_53] : memref<16x128xf32, #tpu.memory_space<vmem>>, vector<16x128xf32>
    tpu.vector_store %arg6[%c0_52, %c0_53], %65 {strides = array<i32>} : memref<16x128xf32, #tpu.memory_space<vmem>>, vector<16x128xf32>,
    return
  }
  func.func @transform_0(%arg0: i32) -> (i32, i32) {
    %c0_i32 = arith.constant 0 : i32
    %c0_i32_0 = arith.constant 0 : i32
    return %arg0, %c0_i32 : i32, i32
  }
  func.func @transform_1(%arg0: i32) -> (i32, i32) {
    %c0_i32 = arith.constant 0 : i32
    %c0_i32_0 = arith.constant 0 : i32
    %c0_i32_1 = arith.constant 0 : i32
    return %c0_i32, %c0_i32_0 : i32, i32
  }
  func.func @transform_2(%arg0: i32) -> (i32, i32) {
    %c0_i32 = arith.constant 0 : i32
    %c0_i32_0 = arith.constant 0 : i32
    %c0_i32_1 = arith.constant 0 : i32
    return %c0_i32, %c0_i32_0 : i32, i32
  }
  func.func @transform_3(%arg0: i32) -> (i32, i32) {
    %c0_i32 = arith.constant 0 : i32
    %c0_i32_0 = arith.constant 0 : i32
    %c0_i32_1 = arith.constant 0 : i32
    return %c0_i32, %c0_i32_0 : i32, i32
  }
  func.func @transform_4(%arg0: i32) -> (i32, i32) {
    %c0_i32 = arith.constant 0 : i32
    %c0_i32_0 = arith.constant 0 : i32
    %c0_i32_1 = arith.constant 0 : i32
    return %c0_i32, %c0_i32_0 : i32, i32
  }
  func.func @transform_5(%arg0: i32) -> (i32, i32) {
    %c0_i32 = arith.constant 0 : i32
    %c0_i32_0 = arith.constant 0 : i32
    return %arg0, %c0_i32 : i32, i32
  }
}

</mosaic_0001>

<bundles_post_ra>
// kernel: tpu_custom_call.1
= control target key start
LH: loop header
LB: loop body
LE: loop exit
PB: predicated region body
PF: predicated region fallthrough
CT: control target
= control target key end

     0   :  { %10 = vsyncpa [#allocation3], 0  ;;  %s1976_s0 = inlined_call_operand.hbm [shape: bf16[16,600], index: 0, kind: input, shape index: {}]   ;;  %s1977_s1 = inlined_call_operand.hbm [shape: bf16[250,128], index: 1, kind: input, shape index: {}]   ;;  %s1978_s2 = inlined_call_operand.vmem [shape: f32[1,128], index: 2, kind: input, shape index: {}]   ;;  %s1979_s3 = inlined_call_operand.hbm [shape: bf16[128,256], index: 3, kind: input, shape index: {}]   ;;  %s1980_s4 = inlined_call_operand.vmem [shape: f32[1,256], index: 4, kind: input, shape index: {}]   ;;  %s1981_s5 = inlined_call_operand.hbm [shape: f32[16,128], index: 5, kind: output, shape index: {}]  }
   0x1   :  { %11 = vsyncpa [#allocation6], 0 }
   0x2   :  { %12 = vsyncpa [#allocation4], 0  ;;  %s1602_s18 = smov [#allocation5]   ;;  %s1508_s22 = scalar_lea.hbm %s1977_s1, 2048 }
   0x3   :  { %s30_s19 = sshll.u32 %s1602_s18, 4  ;;  %p1509_p0 = scmp.ne.s32.totalorder %s1977_s1, %s1508_s22  ;;  %s31_s19 = int_to_ptr.vmem [resolvable:$true] %s30_s19 }
   0x4   :  { %p1512_p1 = scmp.lt.u32.totalorder %s1508_s22, %s1977_s1 }
   0x6   :  { %p1514_p2 = pnand %p1512_p1, %p1509_p0 }
   0x8   :  { %1517 = shalt.err (!%p1514_p2)
}
   0x9   :  { %s1518_s27 = scalar_lea.vmem %s31_s19, 2048  ;;  %p1523_p4 = scmp.lt.s32.totalorder %s31_s19, %s31_s19 }
   0xa   :  { %p1519_p3 = scmp.ne.s32.totalorder %s31_s19, %s1518_s27  ;;  %p1524_p5 = scmp.lt.s32.totalorder %s1518_s27, %s1518_s27 }
   0xc   :  { %p1525_p6 = por %p1524_p5, %p1523_p4 }
   0xe   :  { %p1526_p7 = pnand %p1525_p6, %p1519_p3 }
  0x10   :  { %1529 = shalt.err (!%p1526_p7)
}
  0x11   :  { %s1603_s28 = smov 64   ;;  %s1604_s29 = smov 4  }
  0x12   :  { %36 = dma.hbm_to_vmem [thread:$0]  %s1977_s1, 2048, %s31_s19, [#allocation6], %s1603_s28, %s1603_s28, %s1604_s29  }
  0x13   :  { %s1605_s7 = smov [#allocation2]   ;;  %s1530_s11 = scalar_lea.hbm %s1976_s0, 640 }
  0x14   :  { %s18_s8 = sshll.u32 %s1605_s7, 4  ;;  %p1531_p8 = scmp.ne.s32.totalorder %s1976_s0, %s1530_s11  ;;  %s19_s8 = int_to_ptr.vmem [resolvable:$true] %s18_s8 }
  0x15   :  { %p1534_p9 = scmp.lt.u32.totalorder %s1530_s11, %s1976_s0 }
  0x17   :  { %p1536_p10 = pnand %p1534_p9, %p1531_p8 }
  0x19   :  { %1539 = shalt.err (!%p1536_p10)
}
  0x1a   :  { %s1540_s16 = scalar_lea.vmem %s19_s8, 640  ;;  %p1545_p12 = scmp.lt.s32.totalorder %s19_s8, %s19_s8 }
  0x1b   :  { %p1541_p11 = scmp.ne.s32.totalorder %s19_s8, %s1540_s16  ;;  %p1546_p13 = scmp.lt.s32.totalorder %s1540_s16, %s1540_s16 }
  0x1d   :  { %p1547_p0 = por %p1546_p13, %p1545_p12 }
  0x1f   :  { %p1548_p1 = pnand %p1547_p0, %p1541_p11 }
  0x21   :  { %1551 = shalt.err (!%p1548_p1)
}
  0x22   :  { %s1606_s1 = smov 320   ;;  %s1607_s17 = smov 20  }
  0x23   :  { %24 = dma.hbm_to_vmem [thread:$0]  %s1976_s0, 640, %s19_s8, [#allocation3], %s1606_s1, %s1606_s1, %s1607_s17  }
  0x24   :  { %s1608_s20 = smov [#allocation7]   ;;  %s1552_s24 = scalar_lea.hbm %s1979_s3, 2048 }
  0x25   :  { %s44_s21 = sshll.u32 %s1608_s20, 4  ;;  %p1553_p2 = scmp.ne.s32.totalorder %s1979_s3, %s1552_s24  ;;  %s45_s21 = int_to_ptr.vmem [resolvable:$true] %s44_s21 }
  0x26   :  { %p1556_p3 = scmp.lt.u32.totalorder %s1552_s24, %s1979_s3 }
  0x28   :  { %p1558_p4 = pnand %p1556_p3, %p1553_p2 }
  0x2a   :  { %1561 = shalt.err (!%p1558_p4)
}
  0x2b   :  { %s1562_s29 = scalar_lea.vmem %s45_s21, 2048  ;;  %p1567_p6 = scmp.lt.s32.totalorder %s45_s21, %s45_s21 }
  0x2c   :  { %p1563_p5 = scmp.ne.s32.totalorder %s45_s21, %s1562_s29  ;;  %p1568_p7 = scmp.lt.s32.totalorder %s1562_s29, %s1562_s29 }
  0x2e   :  { %p1569_p8 = por %p1568_p7, %p1567_p6 }
  0x30   :  { %p1570_p9 = pnand %p1569_p8, %p1563_p5 }
  0x32   :  { %1573 = shalt.err (!%p1570_p9)
}
  0x33   :  { %s1609_s0 = smov 128   ;;  %s1610_s30 = smov 8  }
  0x34   :  { %50 = dma.hbm_to_vmem [thread:$0]  %s1979_s3, 2048, %s45_s21, [#allocation6], %s1609_s0, %s1609_s0, %s1610_s30  }
  0x35   :  { %1596 = dma.done.wait [#allocation3], 640  }
  0x36   :  { %1597 = vsyncadd [#allocation3], 4294966656 }
  0x37   :  { %1598 = dma.done.wait [#allocation6], 4096  }
  0x38   :  { %1599 = vsyncadd [#allocation6], 4294963200  ;;  %v1611_v0 = vmov 0   ;;  %vm292_vm0 = vcmask 998400   ;;  %v1431_v1 = vld [vmem:[#allocation2 + $0x4] ss:$20 sps:$4 sm:$0xff]  }
  0x39   :  { %211 = vmatprep.subr.bf16.mxu0 %v1611_v0  ;;  %vm203_vm1 = vcmask 588800   ;;  %v1691_v2 = vld [vmem:[#allocation2] ss:$20 sps:$4 sm:$0xff]   ;;  %s1612_s8 = smov 28   ;;  %v1434_v3 = vld [vmem:[#allocation2 + $0x8] ss:$20 sps:$4 sm:$0xff]   ;;  %1176 = vmatprep.mubr.msk.bf16.mxu1 %vm292_vm0, %v1431_v1 }
  0x3a   :  { %417 = vrot.lane.b32.xlu0 %v1431_v1, %s1612_s8  ;;  %415 = vrot.lane.b32.xlu1 %v1691_v2, %s1612_s8  ;;  %v65_v4 = vld [vmem:[#allocation5 + $0x18] sm:$0xe]  ;;  %v66_v5 = vld [vmem:[#allocation5 + $0x1c] sm:$0xf]  ;;  %v1696_v7 = vld [vmem:[#allocation5 + $0x20] sm:$0xff]   ;;  %s1613_s3 = smov 78  }
  0x3b   :  { %1171 = vmatprep.mubr.msk.bf16.mxu0 %vm203_vm1, %v1431_v1  ;;  %v1158_v6 = vcombine.low %v65_v4, %v66_v5  ;;  %vm165_vm2 = vcmask 1046528   ;;  %v1698_v8 = vld [vmem:[#allocation5 + $0x28] sm:$0xff]   ;;  %v1700_v9 = vld [vmem:[#allocation2 + $0x8] ss:$20 sps:$4 sm:$0xff]   ;;  %v167_v11 = vrot.slane %v1696_v7, 1  ;;  %v1709_v16 = vld [vmem:[#allocation5 + $0x38] sm:$0xff]  }
  0x3c   :  { %v1703_v12 = vld [vmem:[#allocation5 + $0x30] sm:$0xff]   ;;  %v1705_v13 = vld [vmem:[#allocation2 + $0xc] ss:$20 sps:$4 sm:$0xff]   ;;  %v169_v14 = vrot.slane %v1698_v8, 1  ;;  %v1720_v21 = vld [vmem:[#allocation5 + $0x48] sm:$0xff]   ;;  %s1614_s9 = smov 56  }
  0x3d   :  { %v166_v10 = vrot.slane %v1158_v6, 1  ;;  %v1711_v17 = vld [vmem:[#allocation5 + $0x40] sm:$0xff]   ;;  %v171_v20 = vrot.slane %v1703_v12, 1  ;;  %v1723_v22 = vld [vmem:[#allocation5 + $0x8] sm:$0xff]   ;;  %v1438_v23 = vld [vmem:[#allocation2 + $0x4] ss:$20 sps:$4 sm:$0xff]  }
  0x3e   :  { %419 = vrot.lane.b32.xlu0 %v1434_v3, %s1612_s8  ;;  %361 = vrot.lane.b32.xlu1 %v1431_v1, %s1613_s3  ;;  %v1714_v18 = vld [vmem:[#allocation5] sm:$0xff]   ;;  %v170_v19 = vsel %vm165_vm2, %v167_v11, %v169_v14  ;;  %v173_v25 = vrot.slane %v1709_v16, 1  ;;  %v1731_v26 = vld [vmem:[#allocation5 + $0x50] sm:$0xff]   ;;  %v258_v28 = vld [vmem:[#allocation5 + $0x18] sm:$0xf]  ;;  %s1615_s10 = smov 106  }
  0x3f   :  { %v168_v15 = vsel %vm165_vm2, %v166_v10, %v167_v11  ;;  %1228 = vmatprep.subr.bf16.mxu1 %v1711_v17  ;;  %v172_v24 = vsel %vm165_vm2, %v169_v14, %v171_v20  ;;  %v1734_v27 = vld [vmem:[#allocation5 + $0x10] sm:$0xff]   ;;  %v175_v29 = vrot.slane %v1711_v17, 1  ;;  %v1739_v30 = vld [vmem:[#allocation5 + $0x58] sm:$0xff]   ;;  %v1743_v32 = vcombine.low %v258_v28, %v66_v5  ;;  %v1751_v38 = vld [vmem:[#allocation5 + $0x60] sm:$0xff]   ;;  %s1616_s11 = smov 84   ;;  %s1617_s12 = smov 6  }
  0x40   :  { %212 = vmatpush1.bf16.msra.mxu0 %v168_v15  ;;  %1229 = vmatpush3.bf16.msra.mxu1 %v1714_v18  ;;  %v174_v31 = vsel %vm165_vm2, %v171_v20, %v173_v25  ;;  %v1450_v33 = vld [vmem:[#allocation2 + $0xc] ss:$20 sps:$4 sm:$0xff]   ;;  %v1454_v34 = vld [vmem:[#allocation2 + $0x10] ss:$20 sps:$4 sm:$0xff]   ;;  %v177_v36 = vrot.slane %v1720_v21, 1  ;;  %v179_v39 = vrot.slane %v1731_v26, 1 }
  0x41   :  { %213 = vmatprep.subr.bf16.mxu0 %v1611_v0  ;;  %1230 = vmatprep.subr.bf16.mxu1 %v1720_v21  ;;  %v176_v35 = vsel %vm165_vm2, %v173_v25, %v175_v29  ;;  %v1455_v37 = vld [vmem:[#allocation2 + $0x8] ss:$20 sps:$4 sm:$0xff]   ;;  %v181_v40 = vrot.slane %v1739_v30, 1  ;;  %v1757_v41 = vld [vmem:[#allocation5 + $0x68] sm:$0xff]   ;;  %v1771_v45 = vld [vmem:[#allocation5 + $0x78] sm:$0x1f]  }
  0x42   :  { %363 = vrot.lane.b32.xlu0 %v1434_v3, %s1613_s3  ;;  %359 = vrot.lane.b32.xlu1 %v1691_v2, %s1613_s3  ;;  %v178_v42 = vsel %vm165_vm2, %v175_v29, %v177_v36  ;;  %v1763_v43 = vld [vmem:[#allocation5 + $0x70] sm:$0xff]   ;;  %v180_v44 = vsel %vm165_vm2, %v177_v36, %v179_v39  ;;  %vm295_vm3 = vcmask 1044480   ;;  %v183_v47 = vrot.slane %v1751_v38, 1  ;;  %s1618_s13 = smov 34   ;;  %v1462_v48 = vld [vmem:[#allocation2 + $0xc] ss:$20 sps:$4 sm:$0xff]  }
  0x43   :  { %v182_v46 = vsel %vm165_vm2, %v179_v39, %v181_v40  ;;  %v185_v50 = vrot.slane %v1757_v41, 1  ;;  %v1460_v51 = vld [vmem:[#allocation2 + $0x10] ss:$20 sps:$4 sm:$0xff]   ;;  %s1619_s14 = smov 112   ;;  %v187_v53 = vrot.slane %v1763_v43, 1  ;;  %v189_v55 = vrot.slane %v1771_v45, 1 }
  0x44   :  { %214 = vmatpush1.bf16.msra.mxu0 %v170_v19  ;;  %1231 = vmatpush3.bf16.msra.mxu1 %v1723_v22  ;;  %v184_v49 = vsel %vm165_vm2, %v181_v40, %v183_v47  ;;  %vm207_vm4 = vcmask 1043456   ;;  %vm421_vm5 = vcmask 228352   ;;  %vm365_vm6 = vcmask 637952   ;;  %v1463_v36 = vld [vmem:[#allocation5] sm:$0xff]  }
  0x45   :  { %215 = vmatprep.subr.bf16.mxu0 %v1611_v0  ;;  %1232 = vmatprep.subr.bf16.mxu1 %v1731_v26  ;;  %v186_v52 = vsel %vm165_vm2, %v183_v47, %v185_v50  ;;  %v188_v54 = vsel %vm165_vm2, %v185_v50, %v187_v53  ;;  %v190_v56 = vsel %vm165_vm2, %v187_v53, %v189_v55  ;;  %v209_v57 = vsel %vm207_vm4, %v189_v55, 0 }
  0x46   :  { %546 = vrot.lane.b32.xlu0 %v1700_v9, %s1614_s9  ;;  %548 = vrot.lane.b32.xlu1 %v1705_v13, %s1614_s9  ;;  %vm550_vm7 = vcmask 457728   ;;  %vm494_vm8 = vcmask 867328   ;;  %vm679_vm9 = vcmask 687104   ;;  %vm606_vm10 = vcmask 48128  }
  0x47   :  { %vm735_vm11 = vcmask 277504   ;;  %vm824_vm12 = vcmask 916480  }
  0x48   :  { %216 = vmatpush1.bf16.msra.mxu0 %v172_v24  ;;  %1233 = vmatpush3.bf16.msra.mxu1 %v1734_v27 }
  0x49   :  { %217 = vmatprep.subr.bf16.mxu0 %v1611_v0  ;;  %1234 = vmatprep.subr.bf16.mxu1 %v1739_v30 }
  0x4a   :  { %544 = vrot.lane.b32.xlu0 %v1438_v23, %s1614_s9  ;;  %490 = vrot.lane.b32.xlu1 %v1700_v9, %s1615_s10 }
  0x4c   :  { %218 = vmatpush1.bf16.msra.mxu0 %v174_v31  ;;  %1235 = vmatpush3.bf16.msra.mxu1 %v1743_v32 }
  0x4d   :  { %219 = vmatprep.subr.bf16.mxu0 %v1611_v0  ;;  %1236 = vmatprep.subr.bf16.mxu1 %v1751_v38 }
  0x4e   :  { %492 = vrot.lane.b32.xlu0 %v1705_v13, %s1615_s10  ;;  %488 = vrot.lane.b32.xlu1 %v1438_v23, %s1615_s10 }
  0x50   :  { %220 = vmatpush1.bf16.msra.mxu0 %v176_v35  ;;  %1237 = vmatpush3.bf16.msra.mxu1 %v1696_v7 }
  0x51   :  { %221 = vmatprep.subr.bf16.mxu0 %v1611_v0  ;;  %1238 = vmatprep.subr.bf16.mxu1 %v1757_v41 }
  0x52   :  { %675 = vrot.lane.b32.xlu0 %v1450_v33, %s1616_s11  ;;  %677 = vrot.lane.b32.xlu1 %v1454_v34, %s1616_s11 }
  0x54   :  { %222 = vmatpush1.bf16.msra.mxu0 %v178_v42  ;;  %1239 = vmatpush3.bf16.msra.mxu1 %v1698_v8 }
  0x55   :  { %223 = vmatprep.subr.bf16.mxu0 %v1611_v0  ;;  %1240 = vmatprep.subr.bf16.mxu1 %v1763_v43 }
  0x56   :  { %673 = vrot.lane.b32.xlu0 %v1455_v37, %s1616_s11  ;;  %602 = vrot.lane.b32.xlu1 %v1700_v9, %s1617_s12 }
  0x58   :  { %224 = vmatpush1.bf16.msra.mxu0 %v180_v44  ;;  %1241 = vmatpush3.bf16.msra.mxu1 %v1703_v12  ;;  %v1464_v44 = vld [vmem:[#allocation5 + $0x8] sm:$0xff]  }
  0x59   :  { %225 = vmatprep.subr.bf16.mxu0 %v1611_v0  ;;  %1404 = vmatprep.subr.msk.bf16.mxu1 %vm295_vm3, %v1771_v45 }
  0x5a   :  { %604 = vrot.lane.b32.xlu0 %v1705_v13, %s1617_s12  ;;  %600 = vrot.lane.b32.xlu1 %v1438_v23, %s1617_s12 }
  0x5c   :  { %226 = vmatpush1.bf16.msra.mxu0 %v182_v46  ;;  %1243 = vmatpush3.bf16.msra.mxu1 %v1709_v16 }
  0x5d   :  { %227 = vmatprep.subr.bf16.mxu0 %v1611_v0  ;;  %1250 = vmatprep.subr.bf16.mxu1 %v1711_v17 }
  0x5e   :  { %731 = vrot.lane.b32.xlu0 %v1450_v33, %s1618_s13  ;;  %733 = vrot.lane.b32.xlu1 %v1454_v34, %s1618_s13 }
  0x5f   :  { %332 = vmatmul.mubr.bf16.vlgmr.msra.gmra.mrb[0].mxu1 %v1691_v2 }
  0x60   :  { %228 = vmatpush1.bf16.msra.mxu0 %v184_v49  ;;  %1251 = vmatpush3.bf16.msra.mxu1 %v1714_v18 }
  0x61   :  { %229 = vmatprep.subr.bf16.mxu0 %v1611_v0  ;;  %1252 = vmatprep.subr.bf16.mxu1 %v1720_v21 }
  0x62   :  { %729 = vrot.lane.b32.xlu0 %v1455_v37, %s1618_s13  ;;  %820 = vrot.lane.b32.xlu1 %v1462_v48, %s1619_s14  ;;  %v1465_v48 = vld [vmem:[#allocation5 + $0x10] sm:$0xff]  }
  0x64   :  { %230 = vmatpush1.bf16.msra.mxu0 %v186_v52  ;;  %1253 = vmatpush3.bf16.msra.mxu1 %v1723_v22 }
  0x65   :  { %231 = vmatprep.subr.bf16.mxu0 %v1611_v0  ;;  %1254 = vmatprep.subr.bf16.mxu1 %v1731_v26 }
  0x66   :  { %822 = vrot.lane.b32.xlu0 %v1460_v51, %s1619_s14 }
  0x68   :  { %232 = vmatpush1.bf16.msra.mxu0 %v188_v54  ;;  %1255 = vmatpush3.bf16.msra.mxu1 %v1734_v27 }
  0x69   :  { %233 = vmatprep.subr.bf16.mxu0 %v1611_v0  ;;  %1256 = vmatprep.subr.bf16.mxu1 %v1739_v30 }
  0x6c   :  { %234 = vmatpush1.bf16.msra.mxu0 %v190_v56  ;;  %1257 = vmatpush3.bf16.msra.mxu1 %v1743_v32 }
  0x6d   :  { %235 = vmatprep.subr.bf16.mxu0 %v1611_v0  ;;  %1258 = vmatprep.subr.bf16.mxu1 %v1751_v38 }
  0x70   :  { %236 = vmatpush1.bf16.msra.mxu0 %v209_v57  ;;  %1259 = vmatpush3.bf16.msra.mxu1 %v1696_v7 }
  0x71   :  { %1272 = vmatprep.subr.bf16.mxu0 %v1711_v17  ;;  %1260 = vmatprep.subr.bf16.mxu1 %v1757_v41 }
  0x73   :  { %244 = vmatmul.mubr.bf16.vlgmr.msra.gmra.mrb[0].mxu0 %v1691_v2 }
  0x74   :  { %1273 = vmatpush3.bf16.msra.mxu0 %v1714_v18  ;;  %1261 = vmatpush3.bf16.msra.mxu1 %v1698_v8 }
  0x75   :  { %1274 = vmatprep.subr.bf16.mxu0 %v1720_v21  ;;  %1262 = vmatprep.subr.bf16.mxu1 %v1763_v43 }
  0x78   :  { %1275 = vmatpush3.bf16.msra.mxu0 %v1723_v22  ;;  %1263 = vmatpush3.bf16.msra.mxu1 %v1703_v12 }
  0x79   :  { %1276 = vmatprep.subr.bf16.mxu0 %v1731_v26  ;;  %1405 = vmatprep.subr.msk.bf16.mxu1 %vm295_vm3, %v1771_v45 }
  0x7c   :  { %1277 = vmatpush3.bf16.msra.mxu0 %v1734_v27  ;;  %1265 = vmatpush3.bf16.msra.mxu1 %v1709_v16 }
  0x7d   :  { %1278 = vmatprep.subr.bf16.mxu0 %v1739_v30  ;;  %1294 = vmatprep.subr.bf16.mxu1 %v1711_v17 }
  0x80   :  { %1279 = vmatpush3.bf16.msra.mxu0 %v1743_v32 }
  0x81   :  { %1280 = vmatprep.subr.bf16.mxu0 %v1751_v38 }
  0x84   :  { %1281 = vmatpush3.bf16.msra.mxu0 %v1696_v7 }
  0x85   :  { %1282 = vmatprep.subr.bf16.mxu0 %v1757_v41 }
  0x88   :  { %1283 = vmatpush3.bf16.msra.mxu0 %v1698_v8 }
  0x89   :  { %1284 = vmatprep.subr.bf16.mxu0 %v1763_v43 }
  0x8c   :  { %1285 = vmatpush3.bf16.msra.mxu0 %v1703_v12 }
  0x8d   :  { %1406 = vmatprep.subr.msk.bf16.mxu0 %vm295_vm3, %v1771_v45 }
  0x90   :  { %1287 = vmatpush3.bf16.msra.mxu0 %v1709_v16 }
  0x91   :  { %1316 = vmatprep.subr.bf16.mxu0 %v1711_v17 }
  0xac   :  { %v418_v58 = vpop.permute.xlu0 %417  ;;  %v416_v59 = vpop.permute.xlu1 %415 }
  0xad   :  { %v422_v63 = vsel %vm421_vm5, %v416_v59, %v418_v58  ;;  %v1478_v59 = vld [vmem:[#allocation7 + $0x4] ss:$8 sps:$4 sm:$0xff]  }
  0xb0   :  { %v420_v60 = vpop.permute.xlu0 %419  ;;  %v362_v62 = vpop.permute.xlu1 %361 }
  0xb1   :  { %v423_v61 = vsel %vm421_vm5, %v418_v58, %v420_v60  ;;  %v1476_v58 = vld [vmem:[#allocation7] ss:$8 sps:$4 sm:$0xff]   ;;  %v1481_v60 = vld [vmem:[#allocation7 + $0x14] ss:$8 sps:$4 sm:$0xff]  }
  0xb2   :  { %1181 = vmatprep.mubr.msk.bf16.mxu0 %vm292_vm0, %v423_v61  ;;  %v1479_v61 = vld [vmem:[#allocation7 + $0x10] ss:$8 sps:$4 sm:$0xff]  }
  0xb3   :  { %461 = vmatmul.mubr.bf16.vlgmr.msra.gmra.mrb[4].mxu0 %v422_v63  ;;  %v1482_v63 = vld [vmem:[#allocation7 + $0x20] ss:$8 sps:$4 sm:$0xff]  }
  0xb4   :  { %1317 = vmatpush3.bf16.msra.mxu0 %v1714_v18  ;;  %v364_v1 = vpop.permute.xlu0 %363  ;;  %v360_v3 = vpop.permute.xlu1 %359 }
  0xb5   :  { %v367_v2 = vsel %vm365_vm6, %v362_v62, %v364_v1  ;;  %1318 = vmatprep.subr.bf16.mxu0 %v1720_v21  ;;  %v366_v4 = vsel %vm365_vm6, %v360_v3, %v362_v62  ;;  %v1484_v62 = vld [vmem:[#allocation7 + $0x24] ss:$8 sps:$4 sm:$0xff]   ;;  %v1485_v1 = vld [vmem:[#allocation7 + $0x30] ss:$8 sps:$4 sm:$0xff]  }
  0xb6   :  { %1180 = vmatprep.mubr.msk.bf16.mxu1 %vm292_vm0, %v367_v2  ;;  %v1487_v2 = vld [vmem:[#allocation7 + $0x34] ss:$8 sps:$4 sm:$0xff]   ;;  %v1490_v3 = vld [vmem:[#allocation7 + $0x44] ss:$8 sps:$4 sm:$0xff]  }
  0xb7   :  { %405 = vmatmul.mubr.bf16.vlgmr.msra.gmra.mrb[4].mxu1 %v366_v4  ;;  %v1488_v4 = vld [vmem:[#allocation7 + $0x40] ss:$8 sps:$4 sm:$0xff]  }
  0xb8   :  { %1295 = vmatpush3.bf16.msra.mxu1 %v1714_v18  ;;  %1319 = vmatpush3.bf16.msra.mxu0 %v1723_v22  ;;  %v547_v5 = vpop.permute.xlu0 %546  ;;  %v549_v6 = vpop.permute.xlu1 %548 }
  0xb9   :  { %1296 = vmatprep.subr.bf16.mxu1 %v1720_v21  ;;  %1320 = vmatprep.subr.bf16.mxu0 %v1731_v26  ;;  %v552_v9 = vsel %vm550_vm7, %v547_v5, %v549_v6  ;;  %v1491_v6 = vld [vmem:[#allocation7 + $0x50] ss:$8 sps:$4 sm:$0xff]  }
  0xba   :  { %1186 = vmatprep.mubr.msk.bf16.mxu0 %vm292_vm0, %v552_v9  ;;  %v1496_v9 = vld [vmem:[#allocation7 + $0x64] ss:$8 sps:$4 sm:$0xff]  }
  0xbc   :  { %1297 = vmatpush3.bf16.msra.mxu1 %v1723_v22  ;;  %1321 = vmatpush3.bf16.msra.mxu0 %v1734_v27  ;;  %v545_v10 = vpop.permute.xlu0 %544  ;;  %v491_v11 = vpop.permute.xlu1 %490 }
  0xbd   :  { %1298 = vmatprep.subr.bf16.mxu1 %v1731_v26  ;;  %1322 = vmatprep.subr.bf16.mxu0 %v1739_v30  ;;  %v551_v24 = vsel %vm550_vm7, %v545_v10, %v547_v5  ;;  %v1493_v5 = vld [vmem:[#allocation7 + $0x54] ss:$8 sps:$4 sm:$0xff]   ;;  %v1494_v10 = vld [vmem:[#allocation7 + $0x60] ss:$8 sps:$4 sm:$0xff]  }
  0xc0   :  { %1299 = vmatpush3.bf16.msra.mxu1 %v1734_v27  ;;  %1323 = vmatpush3.bf16.msra.mxu0 %v1743_v32  ;;  %v493_v13 = vpop.permute.xlu0 %492  ;;  %v489_v19 = vpop.permute.xlu1 %488 }
  0xc1   :  { %1300 = vmatprep.subr.bf16.mxu1 %v1739_v30  ;;  %1324 = vmatprep.subr.bf16.mxu0 %v1751_v38  ;;  %v496_v14 = vsel %vm494_vm8, %v491_v11, %v493_v13  ;;  %v495_v28 = vsel %vm494_vm8, %v489_v19, %v491_v11  ;;  %v1499_v11 = vld [vmem:[#allocation7 + $0x74] ss:$8 sps:$4 sm:$0xff]   ;;  %v1497_v13 = vld [vmem:[#allocation7 + $0x70] ss:$8 sps:$4 sm:$0xff]  }
  0xc2   :  { %1185 = vmatprep.mubr.msk.bf16.mxu1 %vm292_vm0, %v496_v14 }
  0xc4   :  { %1301 = vmatpush3.bf16.msra.mxu1 %v1743_v32  ;;  %1325 = vmatpush3.bf16.msra.mxu0 %v1696_v7  ;;  %v676_v15 = vpop.permute.xlu0 %675  ;;  %v678_v20 = vpop.permute.xlu1 %677 }
  0xc5   :  { %1302 = vmatprep.subr.bf16.mxu1 %v1751_v38  ;;  %1326 = vmatprep.subr.bf16.mxu0 %v1757_v41  ;;  %v681_v25 = vsel %vm679_vm9, %v676_v15, %v678_v20 }
  0xc8   :  { %1303 = vmatpush3.bf16.msra.mxu1 %v1696_v7  ;;  %1327 = vmatpush3.bf16.msra.mxu0 %v1698_v8  ;;  %v674_v23 = vpop.permute.xlu0 %673  ;;  %v603_v31 = vpop.permute.xlu1 %602 }
  0xc9   :  { %1304 = vmatprep.subr.bf16.mxu1 %v1757_v41  ;;  %1328 = vmatprep.subr.bf16.mxu0 %v1763_v43  ;;  %v680_v39 = vsel %vm679_vm9, %v674_v23, %v676_v15 }
  0xcc   :  { %1305 = vmatpush3.bf16.msra.mxu1 %v1698_v8  ;;  %1329 = vmatpush3.bf16.msra.mxu0 %v1703_v12  ;;  %v605_v29 = vpop.permute.xlu0 %604  ;;  %v601_v37 = vpop.permute.xlu1 %600 }
  0xcd   :  { %1306 = vmatprep.subr.bf16.mxu1 %v1763_v43  ;;  %1408 = vmatprep.subr.msk.bf16.mxu0 %vm295_vm3, %v1771_v45  ;;  %v608_v33 = vsel %vm606_vm10, %v603_v31, %v605_v29  ;;  %v607_v42 = vsel %vm606_vm10, %v601_v37, %v603_v31 }
  0xd0   :  { %1307 = vmatpush3.bf16.msra.mxu1 %v1703_v12  ;;  %1331 = vmatpush3.bf16.msra.mxu0 %v1709_v16  ;;  %v1899_v34 = vpop.permute.xlu0 %731  ;;  %v734_v46 = vpop.permute.xlu1 %733 }
  0xd1   :  { %1407 = vmatprep.subr.msk.bf16.mxu1 %vm295_vm3, %v1771_v45  ;;  %1360 = vmatprep.subr.bf16.mxu0 %v1711_v17  ;;  %v737_v47 = vsel %vm735_vm11, %v1899_v34, %v734_v46 }
  0xd3   :  { %590 = vmatmul.mubr.bf16.vlgmr.msra.gmra.mrb[8].mxu0 %v551_v24 }
  0xd4   :  { %1309 = vmatpush3.bf16.msra.mxu1 %v1709_v16  ;;  %1361 = vmatpush3.bf16.msra.mxu0 %v1714_v18  ;;  %v730_v35 = vpop.permute.xlu0 %729 }
  0xd5   :  { %1338 = vmatprep.subr.bf16.mxu1 %v1711_v17  ;;  %1362 = vmatprep.subr.bf16.mxu0 %v1720_v21 }
  0xd6   :  { %1191 = vmatprep.mubr.msk.bf16.mxu0 %vm292_vm0, %v681_v25 }
  0xd7   :  { %534 = vmatmul.mubr.bf16.vlgmr.msra.gmra.mrb[8].mxu1 %v495_v28 }
  0xd8   :  { %1339 = vmatpush3.bf16.msra.mxu1 %v1714_v18  ;;  %1363 = vmatpush3.bf16.msra.mxu0 %v1723_v22  ;;  %v1912_v40 = vpop.permute.xlu0 %822 }
  0xd9   :  { %1340 = vmatprep.subr.bf16.mxu1 %v1720_v21  ;;  %1364 = vmatprep.subr.bf16.mxu0 %v1731_v26 }
  0xda   :  { %1187 = vmatprep.mubr.msk.bf16.mxu1 %vm292_vm0, %v608_v33 }
  0xdc   :  { %1341 = vmatpush3.bf16.msra.mxu1 %v1723_v22  ;;  %1365 = vmatpush3.bf16.msra.mxu0 %v1734_v27 }
  0xdd   :  { %1342 = vmatprep.subr.bf16.mxu1 %v1731_v26  ;;  %1366 = vmatprep.subr.bf16.mxu0 %v1739_v30 }
  0xe0   :  { %1343 = vmatpush3.bf16.msra.mxu1 %v1734_v27  ;;  %1367 = vmatpush3.bf16.msra.mxu0 %v1743_v32 }
  0xe1   :  { %1344 = vmatprep.subr.bf16.mxu1 %v1739_v30  ;;  %1368 = vmatprep.subr.bf16.mxu0 %v1751_v38 }
  0xe4   :  { %1345 = vmatpush3.bf16.msra.mxu1 %v1743_v32  ;;  %1369 = vmatpush3.bf16.msra.mxu0 %v1696_v7 }
  0xe5   :  { %1346 = vmatprep.subr.bf16.mxu1 %v1751_v38  ;;  %1370 = vmatprep.subr.bf16.mxu0 %v1757_v41 }
  0xe8   :  { %1347 = vmatpush3.bf16.msra.mxu1 %v1696_v7  ;;  %1371 = vmatpush3.bf16.msra.mxu0 %v1698_v8 }
  0xe9   :  { %1348 = vmatprep.subr.bf16.mxu1 %v1757_v41  ;;  %1372 = vmatprep.subr.bf16.mxu0 %v1763_v43 }
  0xec   :  { %1349 = vmatpush3.bf16.msra.mxu1 %v1698_v8  ;;  %1373 = vmatpush3.bf16.msra.mxu0 %v1703_v12 }
  0xed   :  { %1350 = vmatprep.subr.bf16.mxu1 %v1763_v43  ;;  %1410 = vmatprep.subr.msk.bf16.mxu0 %vm295_vm3, %v1771_v45 }
  0xf0   :  { %1351 = vmatpush3.bf16.msra.mxu1 %v1703_v12  ;;  %1375 = vmatpush3.bf16.msra.mxu0 %v1709_v16 }
  0xf1   :  { %1409 = vmatprep.subr.msk.bf16.mxu1 %vm295_vm3, %v1771_v45  ;;  %908 = vmatprep.subr.bf16.mxu0 %v1611_v0 }
  0xf3   :  { %719 = vmatmul.mubr.bf16.vlgmr.msra.gmra.mrb[12].mxu0 %v680_v39 }
  0xf4   :  { %1353 = vmatpush3.bf16.msra.mxu1 %v1709_v16  ;;  %909 = vmatpush1.bf16.msra.mxu0 %v1463_v36 }
  0xf5   :  { %1382 = vmatprep.subr.bf16.mxu1 %v1711_v17  ;;  %910 = vmatprep.subr.bf16.mxu0 %v1611_v0  ;;  %v1466_v17 = vld [vmem:[#allocation5 + $0x18] sm:$0xff]  }
  0xf6   :  { %1208 = vmatprep.mubr.msk.bf16.mxu0 %vm203_vm1, %v1912_v40 }
  0xf7   :  { %646 = vmatmul.mubr.bf16.vlgmr.msra.gmra.mrb[12].mxu1 %v607_v42 }
  0xf8   :  { %1383 = vmatpush3.bf16.msra.mxu1 %v1714_v18  ;;  %911 = vmatpush1.bf16.msra.mxu0 %v1464_v44  ;;  %v1467_v18 = vld [vmem:[#allocation5 + $0x20] sm:$0xff]  }
  0xf9   :  { %1384 = vmatprep.subr.bf16.mxu1 %v1720_v21  ;;  %912 = vmatprep.subr.bf16.mxu0 %v1611_v0  ;;  %v1468_v21 = vld [vmem:[#allocation5 + $0x28] sm:$0xff]  }
  0xfa   :  { %1192 = vmatprep.mubr.msk.bf16.mxu1 %vm292_vm0, %v737_v47 }
  0xfc   :  { %1385 = vmatpush3.bf16.msra.mxu1 %v1723_v22  ;;  %913 = vmatpush1.bf16.msra.mxu0 %v1465_v48  ;;  %v1469_v22 = vld [vmem:[#allocation5 + $0x30] sm:$0xff]  }
  0xfd   :  { %1386 = vmatprep.subr.bf16.mxu1 %v1731_v26  ;;  %914 = vmatprep.subr.bf16.mxu0 %v1611_v0  ;;  %v1470_v26 = vld [vmem:[#allocation5 + $0x38] sm:$0xff]  }
 0x100   :  { %1387 = vmatpush3.bf16.msra.mxu1 %v1734_v27  ;;  %915 = vmatpush1.bf16.msra.mxu0 %v1466_v17  ;;  %v1471_v27 = vld [vmem:[#allocation5 + $0x40] sm:$0xff]  }
 0x101   :  { %1388 = vmatprep.subr.bf16.mxu1 %v1739_v30  ;;  %916 = vmatprep.subr.bf16.mxu0 %v1611_v0  ;;  %v1473_v30 = vld [vmem:[#allocation5 + $0x50] sm:$0xff]  }
 0x104   :  { %1389 = vmatpush3.bf16.msra.mxu1 %v1743_v32  ;;  %917 = vmatpush1.bf16.msra.mxu0 %v1467_v18  ;;  %v1475_v32 = vld [vmem:[#allocation5 + $0x60] ss:$0 sps:$4 sm:$0xff]  }
 0x105   :  { %1390 = vmatprep.subr.bf16.mxu1 %v1751_v38  ;;  %918 = vmatprep.subr.bf16.mxu0 %v1611_v0  ;;  %v821_v38 = vpop.permute.xlu1 %820 }
 0x108   :  { %1391 = vmatpush3.bf16.msra.mxu1 %v1696_v7  ;;  %919 = vmatpush1.bf16.msra.mxu0 %v1468_v21  ;;  %v736_v7 = vsel %vm735_vm11, %v730_v35, %v1899_v34 }
 0x109   :  { %1392 = vmatprep.subr.bf16.mxu1 %v1757_v41  ;;  %920 = vmatprep.subr.bf16.mxu0 %v1611_v0  ;;  %v825_v41 = vsel %vm824_vm12, %v821_v38, %v1912_v40 }
 0x10c   :  { %1393 = vmatpush3.bf16.msra.mxu1 %v1698_v8  ;;  %921 = vmatpush1.bf16.msra.mxu0 %v1469_v22  ;;  %v1472_v8 = vld [vmem:[#allocation5 + $0x48] sm:$0xff]  }
 0x10d   :  { %1394 = vmatprep.subr.bf16.mxu1 %v1763_v43  ;;  %922 = vmatprep.subr.bf16.mxu0 %v1611_v0 }
 0x110   :  { %1395 = vmatpush3.bf16.msra.mxu1 %v1703_v12  ;;  %923 = vmatpush1.bf16.msra.mxu0 %v1470_v26  ;;  %v1474_v12 = vld [vmem:[#allocation5 + $0x58] sm:$0xff]  }
 0x111   :  { %1411 = vmatprep.subr.msk.bf16.mxu1 %vm295_vm3, %v1771_v45  ;;  %924 = vmatprep.subr.bf16.mxu0 %v1611_v0 }
 0x114   :  { %1397 = vmatpush3.bf16.msra.mxu1 %v1709_v16  ;;  %925 = vmatpush1.bf16.msra.mxu0 %v1471_v27  ;;  %v906_v16 = vsel %vm207_vm4, %v1475_v32, 0 }
 0x115   :  { %926 = vmatprep.subr.bf16.mxu0 %v1611_v0  ;;  %1071 = vmatprep.subr.bf16.mxu1 %v1478_v59 }
 0x117   :  { %775 = vmatmul.mubr.bf16.vlgmr.msra.gmra.mrb[16].mxu1 %v736_v7 }
 0x118   :  { %927 = vmatpush1.bf16.msra.mxu0 %v1472_v8  ;;  %1103 = vmatprep.mubr.bf16.mxu1 %v1611_v0 }
 0x119   :  { %928 = vmatprep.subr.bf16.mxu0 %v1611_v0  ;;  %1072 = vmatpush1.bf16.msra.mxu1 %v1476_v58 }
 0x11a   :  { %1073 = vmatprep.subr.bf16.mxu1 %v1481_v60 }
 0x11c   :  { %929 = vmatpush1.bf16.msra.mxu0 %v1473_v30 }
 0x11d   :  { %930 = vmatprep.subr.bf16.mxu0 %v1611_v0  ;;  %1074 = vmatpush1.bf16.msra.mxu1 %v1479_v61 }
 0x11e   :  { %1075 = vmatprep.subr.bf16.mxu1 %v1484_v62 }
 0x120   :  { %931 = vmatpush1.bf16.msra.mxu0 %v1474_v12 }
 0x121   :  { %932 = vmatprep.subr.bf16.mxu0 %v1611_v0  ;;  %1076 = vmatpush1.bf16.msra.mxu1 %v1482_v63 }
 0x122   :  { %1077 = vmatprep.subr.bf16.mxu1 %v1487_v2 }
 0x124   :  { %933 = vmatpush1.bf16.msra.mxu0 %v906_v16 }
 0x125   :  { %1078 = vmatpush1.bf16.msra.mxu1 %v1485_v1 }
 0x126   :  { %1079 = vmatprep.subr.bf16.mxu1 %v1490_v3 }
 0x127   :  { %941 = vmatmul.mubr.bf16.vlgmr.msra.gmra.mrb[16].mxu0 %v825_v41 }
 0x129   :  { %1080 = vmatpush1.bf16.msra.mxu1 %v1488_v4  ;;  %v1209_v4 = vld [vmem:[%s1978_s2] ss:$0 sm:$0xff]  ;;  %s1620_s2 = smov [#allocation8]  }
 0x12a   :  { %1081 = vmatprep.subr.bf16.mxu1 %v1493_v5 }
 0x12d   :  { %1082 = vmatpush1.bf16.msra.mxu1 %v1491_v6 }
 0x12e   :  { %1083 = vmatprep.subr.bf16.mxu1 %v1496_v9 }
 0x131   :  { %1084 = vmatpush1.bf16.msra.mxu1 %v1494_v10 }
 0x132   :  { %v1244_v43 = vpop.f32.mrb[0].mxu1  ;;  %1085 = vmatprep.subr.bf16.mxu1 %v1499_v11 }
 0x133   :  { %v1245_v45 = vpop.f32.mrb[1].mxu1 }
 0x134   :  { %v1246_v49 = vadd.f32 %v1245_v45, %v1244_v43  ;;  %v1247_v50 = vpop.f32.mrb[2].mxu1 }
 0x135   :  { %v1248_v51 = vpop.f32.mrb[3].mxu1  ;;  %1086 = vmatpush1.bf16.msra.mxu1 %v1497_v13 }
 0x136   :  { %v1249_v52 = vadd.f32 %v1248_v51, %v1247_v50 }
 0x146   :  { %v245_v53 = vpop.f32.mrb[0].mxu0 }
 0x147   :  { %v340_v54 = vmax.f32 %v245_v53, %v1246_v49  ;;  %v247_v55 = vpop.f32.mrb[1].mxu0 }
 0x148   :  { %v248_v56 = vpop.f32.mrb[2].mxu0 }
 0x149   :  { %v341_v57 = vmax.f32 %v248_v56, %v1249_v52  ;;  %v250_v0 = vpop.f32.mrb[3].mxu0 }
 0x186   :  { %v1288_v14 = vpop.f32.mrb[4].mxu0 }
 0x187   :  { %v1289_v15 = vpop.f32.mrb[5].mxu0 }
 0x188   :  { %v1290_v19 = vadd.f32 %v1289_v15, %v1288_v14  ;;  %v1291_v20 = vpop.f32.mrb[6].mxu0 }
 0x189   :  { %v1292_v23 = vpop.f32.mrb[7].mxu0 }
 0x18a   :  { %v1293_v24 = vadd.f32 %v1292_v23, %v1291_v20  ;;  %v1266_v25 = vpop.f32.mrb[4].mxu1  ;;  %v981_v23 = vlaneseq }
 0x18b   :  { %v1267_v28 = vpop.f32.mrb[5].mxu1 }
 0x18c   :  { %v1268_v29 = vadd.f32 %v1267_v28, %v1266_v25  ;;  %v1269_v31 = vpop.f32.mrb[6].mxu1  ;;  %v979_v28 = vld [vmem:[%s1980_s4] sm:$0x3]  ;;  %s1143_s4 = sshll.u32 %s1620_s2, 4  ;;  %s1144_s4 = int_to_ptr.vmem [resolvable:$true] %s1143_s4 }
 0x18d   :  { %v1270_v33 = vpop.f32.mrb[7].mxu1  ;;  %s1574_s18 = scalar_lea.vmem %s1144_s4, 256  ;;  %p1579_p11 = scmp.lt.s32.totalorder %s1144_s4, %s1144_s4 }
 0x18e   :  { %v413_v34 = vmax.f32 %v340_v54, %v1268_v29  ;;  %v1271_v35 = vadd.f32 %v1270_v33, %v1269_v31  ;;  %p1575_p10 = scmp.ne.s32.totalorder %s1144_s4, %s1574_s18  ;;  %p1580_p12 = scmp.lt.s32.totalorder %s1574_s18, %s1574_s18 }
 0x190   :  { %v414_v36 = vmax.f32 %v341_v57, %v1271_v35  ;;  %v469_v37 = vmax.f32 %v413_v34, %v1290_v19  ;;  %p1581_p13 = por %p1580_p12, %p1579_p11 }
 0x192   :  { %v470_v39 = vmax.f32 %v414_v36, %v1293_v24  ;;  %v982_v24 = vshrl.u32 %v981_v23, 7  ;;  %p1582_p0 = pnand %p1581_p13, %p1575_p10 }
 0x194   :  { %v987_v25 = vsub.s32 1, %v982_v24 }
 0x196   :  { %v988_v29 = vrot.slane %v979_v28, %v987_v25 }
 0x1a6   :  { %v1332_v40 = vpop.f32.mrb[8].mxu0 }
 0x1a7   :  { %v1333_v42 = vpop.f32.mrb[9].mxu0 }
 0x1a8   :  { %v1334_v44 = vadd.f32 %v1333_v42, %v1332_v40  ;;  %v1335_v46 = vpop.f32.mrb[10].mxu0 }
 0x1a9   :  { %v1336_v47 = vpop.f32.mrb[11].mxu0 }
 0x1aa   :  { %v1337_v48 = vadd.f32 %v1336_v47, %v1335_v46  ;;  %v1310_v17 = vpop.f32.mrb[8].mxu1 }
 0x1ab   :  { %v1311_v18 = vpop.f32.mrb[9].mxu1 }
 0x1ac   :  { %v1312_v21 = vadd.f32 %v1311_v18, %v1310_v17  ;;  %v1313_v22 = vpop.f32.mrb[10].mxu1 }
 0x1ad   :  { %v1314_v26 = vpop.f32.mrb[11].mxu1 }
 0x1ae   :  { %v542_v27 = vmax.f32 %v469_v37, %v1312_v21  ;;  %v1315_v7 = vadd.f32 %v1314_v26, %v1313_v22 }
 0x1b0   :  { %v543_v8 = vmax.f32 %v470_v39, %v1315_v7  ;;  %v598_v30 = vmax.f32 %v542_v27, %v1334_v44  ;;  %v983_v44 = vsub.s32 0, %v982_v24 }
 0x1b2   :  { %v599_v12 = vmax.f32 %v543_v8, %v1337_v48  ;;  %v984_v17 = vrot.slane %v979_v28, %v983_v44 }
 0x1c6   :  { %v1376_v32 = vpop.f32.mrb[12].mxu0 }
 0x1c7   :  { %v1377_v16 = vpop.f32.mrb[13].mxu0 }
 0x1c8   :  { %v1378_v38 = vadd.f32 %v1377_v16, %v1376_v32  ;;  %v1379_v41 = vpop.f32.mrb[14].mxu0 }
 0x1c9   :  { %v1380_v43 = vpop.f32.mrb[15].mxu0 }
 0x1ca   :  { %v1381_v45 = vadd.f32 %v1380_v43, %v1379_v41  ;;  %v1354_v49 = vpop.f32.mrb[12].mxu1 }
 0x1cb   :  { %v1355_v50 = vpop.f32.mrb[13].mxu1 }
 0x1cc   :  { %v1356_v51 = vadd.f32 %v1355_v50, %v1354_v49  ;;  %v1357_v52 = vpop.f32.mrb[14].mxu1 }
 0x1cd   :  { %v1358_v53 = vpop.f32.mrb[15].mxu1 }
 0x1ce   :  { %v654_v54 = vmax.f32 %v598_v30, %v1356_v51  ;;  %v1359_v55 = vadd.f32 %v1358_v53, %v1357_v52 }
 0x1d0   :  { %v655_v56 = vmax.f32 %v599_v12, %v1359_v55  ;;  %v727_v57 = vmax.f32 %v654_v54, %v1378_v38 }
 0x1d2   :  { %v728_v0 = vmax.f32 %v655_v56, %v1381_v45 }
 0x1ea   :  { %v1398_v58 = vpop.f32.mrb[16].mxu1 }
 0x1eb   :  { %v1399_v59 = vpop.f32.mrb[17].mxu1 }
 0x1ec   :  { %v1400_v60 = vadd.f32 %v1399_v59, %v1398_v58  ;;  %v1401_v61 = vpop.f32.mrb[18].mxu1 }
 0x1ed   :  { %v1402_v62 = vpop.f32.mrb[19].mxu1 }
 0x1ee   :  { %v1403_v63 = vadd.f32 %v1402_v62, %v1401_v61  ;;  %v783_v1 = vmax.f32 %v727_v57, %v1400_v60 }
 0x1f0   :  { %v784_v2 = vmax.f32 %v728_v0, %v1403_v63 }
 0x1fa   :  { %v942_v3 = vpop.f32.mrb[16].mxu0 }
 0x1fb   :  { %v949_v5 = vmax.f32 %v783_v1, %v942_v3  ;;  %v944_v6 = vpop.f32.mrb[17].mxu0 }
 0x1fc   :  { %v945_v9 = vpop.f32.mrb[18].mxu0 }
 0x1fd   :  { %v958_v10 = vadd.f32 %v1209_v4, %v949_v5  ;;  %v950_v11 = vmax.f32 %v784_v2, %v945_v9  ;;  %v947_v13 = vpop.f32.mrb[19].mxu0 }
 0x1ff   :  { %v959_v14 = vadd.f32 %v1209_v4, %v950_v11  ;;  %v960_v15 = vmax.f32 %v958_v10, 0.0 }
 0x201   :  { %v961_v19 = vmax.f32 %v959_v14, 0.0 }
 0x203   :  { %v962_v20 = vpack.c.bf16 %v961_v19, %v960_v15 }
 0x205   :  { %1104 = vmatmul.mubr.bf16.vlgmr.msra.gmra.mrb[20].mxu1 %v962_v20 }
 0x2d8   :  { %v1105_v31 = vpop.f32.mrb[20].mxu1 }
 0x2d9   :  { %v1107_v33 = vpop.f32.mrb[21].mxu1  ;;  %v1106_v18 = vadd.f32 %v1105_v31, %v984_v17 }
 0x2da   :  { %v1108_v34 = vadd.f32 %v1107_v33, %v988_v29  ;;  %v1109_v35 = vpop.f32.mrb[22].mxu1 }
 0x2db   :  { %v1111_v36 = vpop.f32.mrb[23].mxu1  ;;  %v1110_v21 = vadd.f32 %v1109_v35, %v984_v17  ;;  %v1114_v22 = vmax.f32 %v1106_v18, 0.0 }
 0x2dc   :  { %v1226_v37 = vmul.f32 -1.442695, %v1108_v34  ;;  %v1112_v39 = vadd.f32 %v1111_v36, %v988_v29 }
 0x2dd   :  { %v1115_v27 = vmax.f32 %v1110_v21, 0.0 }
 0x2de   :  { %1500 = vpow2.f32 %v1226_v37  ;;  %v1227_v40 = vmul.f32 -1.442695, %v1112_v39 }
 0x2e0   :  { %1502 = vpow2.f32 %v1227_v40 }
 0x2e8   :  { %v1501_v42 = vpop.eup %1500 }
 0x2e9   :  { %v1122_v46 = vadd.f32 1.0, %v1501_v42 }
 0x2ea   :  { %v1503_v47 = vpop.eup %1502 }
 0x2eb   :  { %1504 = vrcp.f32 %v1122_v46  ;;  %v1123_v48 = vadd.f32 1.0, %v1503_v47 }
 0x2ed   :  { %1506 = vrcp.f32 %v1123_v48 }
 0x2f5   :  { %v1505_v26 = vpop.eup %1504 }
 0x2f6   :  { %v1128_v7 = vmul.f32 %v1505_v26, %v1114_v22  ;;  %v1130_v8 = vsub.f32 1.0, %v1505_v26 }
 0x2f7   :  { %v1507_v30 = vpop.eup %1506 }
 0x2f8   :  { %v1129_v12 = vmul.f32 %v1507_v30, %v1115_v27  ;;  %v1131_v32 = vsub.f32 1.0, %v1507_v30  ;;  %v1132_v16 = vmul.f32 %v1130_v8, %v960_v15 }
 0x2fa   :  { %v1133_v38 = vmul.f32 %v1131_v32, %v961_v19  ;;  %v1134_v41 = vadd.f32 %v1132_v16, %v1128_v7 }
 0x2fc   :  { %v1135_v43 = vadd.f32 %v1133_v38, %v1129_v12  ;;  %1136 = vst [vmem:[#allocation8] sm:$0xff] %v1134_v41 }
 0x2fe   :  { %1137 = vst [vmem:[#allocation8 + $0x8] sm:$0xff] %v1135_v43 }
 0x2ff   :  { %1585 = shalt.err (!%p1582_p0)
}
 0x300   :  { %s1586_s21 = scalar_lea.hbm %s1981_s5, 256 }
 0x301   :  { %p1587_p1 = scmp.ne.s32.totalorder %s1981_s5, %s1586_s21  ;;  %p1590_p2 = scmp.lt.u32.totalorder %s1586_s21, %s1981_s5 }
 0x303   :  { %p1592_p3 = pnand %p1590_p2, %p1587_p1 }
 0x305   :  { %1595 = shalt.err (!%p1592_p3)
}
 0x306   :  { %1149 = dma.vmem_to_hbm [thread:$0]  %s1144_s4, 256, %s1981_s5, [#allocation4], %s1609_s0, %s1609_s0, %s1610_s30  }
 0x307   :  { %1600 = dma.done.wait [#allocation4], 256  }
 0x308   :  { %1601 = vsyncadd [#allocation4], 4294967040 }
 0x309   :  { %1153 = vsyncpa [#allocation3], 1 }
 0x30a   :  { %1154 = vsyncpa [#allocation6], 1 }
 0x30b   :  { %1155 = vsyncpa [#allocation4], 1 }

</bundles_post_ra>
